<compile_context>
chip_gen: v7x
topology: tpu7x:2x2x1
jax: 0.10.0
libtpu: 0.0.40
codegen_flags: <defaults>
</compile_context>

<pallas_src>
import functools

import jax
import jax.numpy as jnp
import numpy as np
from jax import lax
from jax.experimental import pallas as pl
from jax.experimental.pallas import tpu as pltpu


def _conv_stats_kernel(x_ref, w_ref, b_ref, y_ref, st_ref, *,
                       K, dilation, Tt, chomp_lo, T_out, im2col):
    """Dilated Conv1d (+bias) for one (n, time-tile) block + raw BN partial stats.

    x_ref:  (1, 1, C_pad, Tt + W)  haloed input window, bf16 (W = chomp_lo + dilation*(K-1))
    w_ref:  (C_out, K*C_pad)       im2col weight, bf16
    b_ref:  (C_out, 1)             bias, f32
    y_ref:  (1, C_out, Tt)         conv output in the CHOMPED frame: y[:, j] = conv[:, chomp_lo + j], bf16
    st_ref: (1, 1, C_out, 2)       raw [sum, sum-of-squares] over this tile's primary range, f32
    """
    win = x_ref[0, 0]                                # (C_pad, Tt + W)
    Tc = Tt + chomp_lo                               # conv columns computed by this tile
    C_pad = win.shape[0]

    if im2col:
        # Small-channel path: one matmul, contraction K*C_pad keeps the MXU better filled.
        if K > 1:
            col = jnp.concatenate(
                [win[:, k * dilation:k * dilation + Tc] for k in range(K)], axis=0)
        else:
            col = win[:, :Tc]
        acc = jnp.dot(w_ref[...], col, preferred_element_type=jnp.float32)
    else:
        # Wide-channel path: K accumulated dots, contraction C_pad (>=128), no im2col copies.
        acc = jnp.dot(w_ref[:, :C_pad], win[:, :Tc],
                      preferred_element_type=jnp.float32)
        for k in range(1, K):
            acc = acc + jnp.dot(w_ref[:, k * C_pad:(k + 1) * C_pad],
                                win[:, k * dilation:k * dilation + Tc],
                                preferred_element_type=jnp.float32)
    acc = acc + b_ref[...]                           # (C_out, Tc) f32

    # Conv intermediate, shifted by chomp_lo (so pass 2 reads plain aligned tiles), stored bf16.
    y_ref[0] = acc[:, chomp_lo:chomp_lo + Tt].astype(y_ref.dtype)

    # Raw BN partials over this tile's primary range [t*Tt, t*Tt + Tt) ∩ [0, T_out).
    toff = pl.program_id(1) * Tt
    pos = toff + lax.broadcasted_iota(jnp.int32, (1, Tt), 1)
    valid = (pos < T_out).astype(jnp.float32)        # (1, Tt)
    a = acc[:, :Tt]
    am = a * valid
    s = jnp.sum(am, axis=1, keepdims=True)           # (C_out, 1)
    ss = jnp.sum(am * a, axis=1, keepdims=True)      # (C_out, 1)
    st_ref[0, 0] = jnp.concatenate([s, ss], axis=1)  # (C_out, 2)


def _bn_act_kernel(y_ref, scale_ref, shift_ref, alpha_ref, o_ref, *, Tw, relu_type):
    """BN scale/shift + activation for one (n, time-tile) block.

    y_ref:     (1, C_out, Tt)  chomped-frame conv intermediate, bf16
    scale_ref: (C_out, 1)      gamma / sqrt(var + eps), f32
    shift_ref: (C_out, 1)      beta - mean * scale, f32
    alpha_ref: (C_out, 1)      PReLU slope (zeros otherwise), f32
    o_ref:     (1, C_out, Tw)  output tile, f32
    """
    z = y_ref[0, :, :Tw].astype(jnp.float32) * scale_ref[...] + shift_ref[...]
    if relu_type == 'prelu':
        a = jnp.where(z > 0, z, alpha_ref[...] * z)
    elif relu_type == 'swish':
        a = z * (1.0 / (1.0 + jnp.exp(-z)))          # exact sigmoid (exp on the EUP)
    else:  # relu
        a = jnp.maximum(z, 0.0)
    o_ref[0] = a.astype(o_ref.dtype)


def temporal_conv_layer(x, w, b, gamma, beta, alpha, *, kernel_size, stride,
                        dilation, padding, relu_type, eps=1e-5, time_tile=1024):
    """x: (N, C_in, T) f32; w: (C_out, C_in, K); returns (N, C_out, T_out - padding) f32."""
    N, C_in, T = x.shape
    C_out = w.shape[0]
    K = kernel_size
    d = dilation
    P = padding
    if stride != 1:
        # TODO(synk): stride != 1 would need strided window reads in the im2col taps.
        raise NotImplementedError("stride != 1 not supported")

    T_pad = T + 2 * P
    T_out = T_pad - d * (K - 1)
    assert T_out > 0
    if P > 0:
        assert P % 2 == 0, "symmetric chomp needs even padding"
        chomp_lo, T_final = P // 2, T_out - P
    else:
        chomp_lo, T_final = 0, T_out
    assert T_final > 0

    # ---- time tiling: one full tile for short sequences, 128-multiple tiles otherwise ----
    if T_out <= time_tile:
        Tt, n_t = T_out, 1
    else:
        assert time_tile % 128 == 0
        Tt, n_t = time_tile, -(-T_out // time_tile)
    n_t2 = -(-T_final // Tt)                         # pass-2 tiles (<= n_t)
    Tw = Tt if Tt % 128 == 0 else T_final            # pass-2 output block width
    W = chomp_lo + d * (K - 1)                       # per-tile right halo
    Tc = Tt + chomp_lo

    # ---- pack operands: bf16 for the MXU, channels padded to the bf16 sublane tile (16) ----
    C_pad = -(-C_in // 16) * 16
    im2col = C_pad < 128
    T_main = n_t * Tt
    T_full = T_main + W                              # >= T_pad, so no real data is dropped
    xp_full = jnp.pad(x.astype(jnp.float32),
                      ((0, 0), (0, C_pad - C_in), (P, T_full - P - T))
                      ).astype(jnp.bfloat16)         # (N, C_pad, T_full)
    # Pre-staged overlapping (haloed) tiles: each grid step fetches only its own window.
    xp_tiles = jnp.stack([xp_full[:, :, t * Tt: t * Tt + Tt + W] for t in range(n_t)],
                         axis=1)                     # (N, n_t, C_pad, Tt + W)
    w_p = jnp.pad(w.astype(jnp.float32), ((0, 0), (0, C_pad - C_in), (0, 0)))
    w2 = jnp.transpose(w_p, (0, 2, 1)).reshape(C_out, K * C_pad).astype(jnp.bfloat16)
    b2 = b.reshape(C_out, 1).astype(jnp.float32)

    # ---- explicit VMEM budgets from the actual per-step blocks (headroom, <=64 MiB for v7x) ----
    est1 = (2 * C_pad * (Tt + W) * 2                 # input window (double-buffered)
            + 2 * C_out * K * C_pad * 2 + 2 * C_out * 4
            + 2 * C_out * Tt * 2 + 2 * C_out * 2 * 4
            + (K if im2col else 1) * C_pad * Tc * 2  # tap copies
            + 4 * C_out * Tc * 4)                    # f32 accumulator + temporaries
    vmem1 = int(min(64 * 2 ** 20, max(32 * 2 ** 20, 2 * est1)))
    est2 = (2 * C_out * Tt * 2 + 6 * C_out * 4
            + 2 * C_out * Tw * 4 + 3 * C_out * Tw * 4)
    vmem2 = int(min(64 * 2 ** 20, max(32 * 2 ** 20, 2 * est2)))

    # ---------------- pass 1: conv + bias + raw BN partials ----------------
    flops1 = 2 * N * n_t * C_out * K * C_pad * Tc
    bytes1 = (int(xp_tiles.size) * 2 + int(w2.size) * 2 + C_out * 4
              + N * C_out * T_main * 2 + N * n_t * C_out * 2 * 4)
    y, stats = pl.pallas_call(
        functools.partial(_conv_stats_kernel, K=K, dilation=d, Tt=Tt,
                          chomp_lo=chomp_lo, T_out=T_out, im2col=im2col),
        grid=(N, n_t),
        in_specs=[
            pl.BlockSpec((1, 1, C_pad, Tt + W), lambda n, t: (n, t, 0, 0)),
            pl.BlockSpec((C_out, K * C_pad), lambda n, t: (0, 0)),
            pl.BlockSpec((C_out, 1), lambda n, t: (0, 0)),
        ],
        out_specs=(
            pl.BlockSpec((1, C_out, Tt), lambda n, t: (n, 0, t)),
            pl.BlockSpec((1, 1, C_out, 2), lambda n, t: (n, t, 0, 0)),
        ),
        out_shape=(
            jax.ShapeDtypeStruct((N, C_out, T_main), jnp.bfloat16),
            jax.ShapeDtypeStruct((N, n_t, C_out, 2), jnp.float32),
        ),
        compiler_params=pltpu.CompilerParams(
            dimension_semantics=("parallel", "parallel"),
            vmem_limit_bytes=vmem1),
        cost_estimate=pl.CostEstimate(flops=int(flops1), transcendentals=0,
                                      bytes_accessed=int(bytes1)),
    )(xp_tiles, w2, b2)

    # ---------------- finalize BN stats in f32 (tiny) ----------------
    cnt = float(N * T_out)
    mean = jnp.sum(stats[..., 0], axis=(0, 1)) / cnt                  # (C_out,)
    var = jnp.maximum(jnp.sum(stats[..., 1], axis=(0, 1)) / cnt - mean * mean, 0.0)
    inv = lax.rsqrt(var + eps)                                        # biased var (BN training fwd)
    g32 = gamma.astype(jnp.float32)
    scale = (g32 * inv).reshape(C_out, 1)
    shift = (beta.astype(jnp.float32) - mean * g32 * inv).reshape(C_out, 1)
    alpha2 = (alpha.astype(jnp.float32) if relu_type == 'prelu'
              else jnp.zeros((C_out,), jnp.float32)).reshape(C_out, 1)

    # ---------------- pass 2: normalize + activation (chomp already folded into y) ----------------
    flops2 = 5 * N * C_out * T_final
    trans2 = N * C_out * T_final if relu_type == 'swish' else 0
    bytes2 = N * C_out * n_t2 * Tt * 2 + 3 * C_out * 4 + N * C_out * T_final * 4
    out = pl.pallas_call(
        functools.partial(_bn_act_kernel, Tw=Tw, relu_type=relu_type),
        grid=(N, n_t2),
        in_specs=[
            pl.BlockSpec((1, C_out, Tt), lambda n, t: (n, 0, t)),
            pl.BlockSpec((C_out, 1), lambda n, t: (0, 0)),
            pl.BlockSpec((C_out, 1), lambda n, t: (0, 0)),
            pl.BlockSpec((C_out, 1), lambda n, t: (0, 0)),
        ],
        out_specs=pl.BlockSpec((1, C_out, Tw), lambda n, t: (n, 0, t)),
        out_shape=jax.ShapeDtypeStruct((N, C_out, T_final), jnp.float32),
        compiler_params=pltpu.CompilerParams(
            dimension_semantics=("parallel", "parallel"),
            vmem_limit_bytes=vmem2),
        cost_estimate=pl.CostEstimate(flops=int(flops2), transcendentals=int(trans2),
                                      bytes_accessed=int(bytes2)),
    )(y, scale, shift, alpha2)
    return out


def _reference(x, w, b, gamma, beta, alpha, *, stride, dilation, padding,
               relu_type, eps=1e-5):
    """Pure-JAX mirror of the PyTorch module (fresh module => BN training batch stats).
    Inputs/weights are bf16-rounded to mirror the kernel's MXU numerics (f32 accumulation)."""
    xb = x.astype(jnp.bfloat16).astype(jnp.float32)
    wb = w.astype(jnp.bfloat16).astype(jnp.float32)
    y = lax.conv_general_dilated(
        xb, wb, window_strides=(stride,), padding=[(padding, padding)],
        rhs_dilation=(dilation,), dimension_numbers=('NCH', 'OIH', 'NCH'),
        precision=lax.Precision.HIGHEST)
    y = y + b[None, :, None]
    mean = jnp.mean(y, axis=(0, 2), keepdims=True)
    var = jnp.mean((y - mean) ** 2, axis=(0, 2), keepdims=True)
    y = (y - mean) * lax.rsqrt(var + eps) * gamma[None, :, None] + beta[None, :, None]
    if padding > 0:
        y = y[:, :, padding // 2: -(padding // 2)]
    if relu_type == 'prelu':
        return jnp.where(y > 0, y, alpha[None, :, None] * y)
    if relu_type == 'swish':
        return y * jax.nn.sigmoid(y)
    return jnp.maximum(y, 0.0)


if __name__ == "__main__":
    key = jax.random.PRNGKey(0)
    kx, kw, kb, kg, kbe, kx2, kx3, kw3 = jax.random.split(key, 8)

    # Small, module-consistent shapes.
    N, C_in, C_out, T = 2, 4, 8, 16
    K, stride = 3, 1

    x = jax.random.normal(kx, (N, C_in, T), jnp.float32)
    w = 0.2 * jax.random.normal(kw, (C_out, C_in, K), jnp.float32)
    b = 0.1 * jax.random.normal(kb, (C_out,), jnp.float32)
    gamma = 1.0 + 0.1 * jax.random.normal(kg, (C_out,), jnp.float32)
    beta = 0.1 * jax.random.normal(kbe, (C_out,), jnp.float32)
    alpha = 0.25 * jnp.ones((C_out,), jnp.float32)   # PyTorch PReLU default init

    TOL = 1e-2  # bf16 MXU operands + bf16 conv intermediate (f32 stats / accumulation)

    # All three activation paths at the basic config (dilation=1, padding=2).
    for relu_type in ('prelu', 'relu', 'swish'):
        out = temporal_conv_layer(x, w, b, gamma, beta, alpha, kernel_size=K, stride=stride,
                                  dilation=1, padding=2, relu_type=relu_type)
        out = jax.block_until_ready(out)
        ref = _reference(x, w, b, gamma, beta, alpha, stride=stride, dilation=1,
                         padding=2, relu_type=relu_type)
        assert out.shape == (N, C_out, T)            # symmetric chomp restores T
        np.testing.assert_allclose(np.asarray(out), np.asarray(ref), rtol=TOL, atol=TOL)

    # Dilated config (dilation=2, padding=4).
    out = temporal_conv_layer(x, w, b, gamma, beta, alpha, kernel_size=K, stride=stride,
                              dilation=2, padding=4, relu_type='prelu')
    out = jax.block_until_ready(out)
    ref = _reference(x, w, b, gamma, beta, alpha, stride=stride, dilation=2,
                     padding=4, relu_type='prelu')
    np.testing.assert_allclose(np.asarray(out), np.asarray(ref), rtol=TOL, atol=TOL)

    # Longer sequence exercising the multi-tile pipelined path (masked tail tile, cross-tile chomp).
    T_long = 300
    x2 = jax.random.normal(kx2, (N, C_in, T_long), jnp.float32)
    out = temporal_conv_layer(x2, w, b, gamma, beta, alpha, kernel_size=K, stride=stride,
                              dilation=1, padding=2, relu_type='prelu', time_tile=128)
    out = jax.block_until_ready(out)
    ref = _reference(x2, w, b, gamma, beta, alpha, stride=stride, dilation=1,
                     padding=2, relu_type='prelu')
    assert out.shape == (N, C_out, T_long)
    np.testing.assert_allclose(np.asarray(out), np.asarray(ref), rtol=TOL, atol=TOL)

    # Wide-channel path (C_pad >= 128 -> K accumulated dots instead of im2col), multi-tile.
    C_big, T_big = 128, 200
    x3 = jax.random.normal(kx3, (N, C_big, T_big), jnp.float32)
    w3 = 0.05 * jax.random.normal(kw3, (C_big, C_big, K), jnp.float32)
    b3 = jnp.zeros((C_big,), jnp.float32)
    g3 = jnp.ones((C_big,), jnp.float32)
    be3 = jnp.zeros((C_big,), jnp.float32)
    al3 = 0.25 * jnp.ones((C_big,), jnp.float32)
    out = temporal_conv_layer(x3, w3, b3, g3, be3, al3, kernel_size=K, stride=stride,
                              dilation=1, padding=2, relu_type='prelu', time_tile=128)
    out = jax.block_until_ready(out)
    ref = _reference(x3, w3, b3, g3, be3, al3, stride=stride, dilation=1,
                     padding=2, relu_type='prelu')
    assert out.shape == (N, C_big, T_big)
    np.testing.assert_allclose(np.asarray(out), np.asarray(ref), rtol=TOL, atol=TOL)

    print("KERNEL_OK")
</pallas_src>

<mosaic_0001>
module attributes {stable_mosaic.version = 11 : i64} {
  func.func @_conv_stats_kernel(%arg0: i32, %arg1: i32, %arg2: memref<1x1x16x21xbf16, #tpu.memory_space<vmem>>, %arg3: memref<8x48xbf16, #tpu.memory_space<vmem>>, %arg4: memref<8x1xf32, #tpu.memory_space<vmem>>, %arg5: memref<1x8x18xbf16, #tpu.memory_space<vmem>>, %arg6: memref<1x1x8x2xf32, #tpu.memory_space<vmem>>) attributes {dimension_semantics = [#tpu.dimension_semantics<parallel>, #tpu.dimension_semantics<parallel>], iteration_bounds = array<i64: 2, 1>, scalar_prefetch = 0 : i64, scratch_operands = 0 : i64, tpu.core_type = #tpu.core_type<tc>, window_params = [{transform_indices = @transform_0, window_bounds = array<i64: 1, 1, 16, 21>}, {pipeline_mode = #tpu.pipeline_mode<synchronous>, transform_indices = @transform_1, window_bounds = array<i64: 8, 48>}, {pipeline_mode = #tpu.pipeline_mode<synchronous>, transform_indices = @transform_2, window_bounds = array<i64: 8, 1>}, {transform_indices = @transform_3, window_bounds = array<i64: 1, 8, 18>}, {transform_indices = @transform_4, window_bounds = array<i64: 1, 1, 8, 2>}]} {
    %c0 = arith.constant 0 : index
    %c0_0 = arith.constant 0 : index
    %c0_1 = arith.constant 0 : index
    %c0_2 = arith.constant 0 : index
    %0 = vector.load %arg2[%c0, %c0_0, %c0_1, %c0_2] : memref<1x1x16x21xbf16, #tpu.memory_space<vmem>>, vector<1x1x16x21xbf16>
    %1 = vector.shape_cast %0 : vector<1x1x16x21xbf16> to vector<16x21xbf16>
    %2 = vector.extract_strided_slice %1 {offsets = [0, 0], sizes = [16, 19], strides = [1, 1]} : vector<16x21xbf16> to vector<16x19xbf16>
    %3 = vector.extract_strided_slice %1 {offsets = [0, 1], sizes = [16, 19], strides = [1, 1]} : vector<16x21xbf16> to vector<16x19xbf16>
    %4 = vector.extract_strided_slice %1 {offsets = [0, 2], sizes = [16, 19], strides = [1, 1]} : vector<16x21xbf16> to vector<16x19xbf16>
    %5 = tpu.concatenate %2, %3, %4 in 0 : vector<16x19xbf16>, vector<16x19xbf16>, vector<16x19xbf16> -> vector<48x19xbf16>
    %c0_3 = arith.constant 0 : index
    %c0_4 = arith.constant 0 : index
    %6 = vector.load %arg3[%c0_3, %c0_4] : memref<8x48xbf16, #tpu.memory_space<vmem>>, vector<8x48xbf16>
    %cst = arith.constant dense<0.000000e+00> : vector<8x19xf32>
    %7 = tpu.matmul %6, %5, %cst {dimension_numbers = #tpu.dot_dimension_numbers<[1], [0], [0], [1], [0, 0, 1, 1], [], []>} : vector<8x48xbf16>, vector<48x19xbf16>, vector<8x19xf32> -> vector<8x19xf32>
    %c0_5 = arith.constant 0 : index
    %c0_6 = arith.constant 0 : index
    %8 = vector.load %arg4[%c0_5, %c0_6] : memref<8x1xf32, #tpu.memory_space<vmem>>, vector<8x1xf32>
    %9 = vector.broadcast %8 : vector<8x1xf32> to vector<8x19xf32>
    %10 = arith.addf %7, %9 : vector<8x19xf32>
    %11 = vector.extract_strided_slice %10 {offsets = [0, 1], sizes = [8, 18], strides = [1, 1]} : vector<8x19xf32> to vector<8x18xf32>
    %12 = arith.truncf %11 : vector<8x18xf32> to vector<8x18xbf16>
    %c0_7 = arith.constant 0 : index
    %c0_8 = arith.constant 0 : index
    %c0_9 = arith.constant 0 : index
    %13 = vector.load %arg5[%c0_7, %c0_8, %c0_9] : memref<1x8x18xbf16, #tpu.memory_space<vmem>>, vector<1x8x18xbf16>
    %14 = vector.shape_cast %13 : vector<1x8x18xbf16> to vector<8x18xbf16>
    %15 = vector.shape_cast %12 : vector<8x18xbf16> to vector<1x8x18xbf16>
    tpu.vector_store %arg5[%c0_7, %c0_8, %c0_9], %15 {strides = array<i32>} : memref<1x8x18xbf16, #tpu.memory_space<vmem>>, vector<1x8x18xbf16>,
    %c18_i32 = arith.constant 18 : i32
    %16 = arith.muli %arg1, %c18_i32 : i32
    %17 = tpu.iota {dimensions = array<i32: 1>} : vector<1x18xi32>
    %18 = vector.broadcast %16 : i32 to vector<1x18xi32>
    %19 = arith.addi %18, %17 : vector<1x18xi32>
    %c18_i32_10 = arith.constant 18 : i32
    %20 = vector.broadcast %c18_i32_10 : i32 to vector<1x18xi32>
    %21 = arith.cmpi slt, %19, %20 : vector<1x18xi32>
    %22 = arith.extui %21 : vector<1x18xi1> to vector<1x18xi32>
    %23 = arith.sitofp %22 : vector<1x18xi32> to vector<1x18xf32>
    %24 = vector.extract_strided_slice %10 {offsets = [0, 0], sizes = [8, 18], strides = [1, 1]} : vector<8x19xf32> to vector<8x18xf32>
    %25 = vector.broadcast %23 : vector<1x18xf32> to vector<8x18xf32>
    %26 = arith.mulf %24, %25 : vector<8x18xf32>
    %cst_11 = arith.constant dense<0.000000e+00> : vector<8xf32>
    %27 = vector.multi_reduction <add>, %26, %cst_11 [1] : vector<8x18xf32> to vector<8xf32>
    %28 = vector.shape_cast %27 : vector<8xf32> to vector<8x1xf32>
    %29 = arith.mulf %26, %24 : vector<8x18xf32>
    %cst_12 = arith.constant dense<0.000000e+00> : vector<8xf32>
    %30 = vector.multi_reduction <add>, %29, %cst_12 [1] : vector<8x18xf32> to vector<8xf32>
    %31 = vector.shape_cast %30 : vector<8xf32> to vector<8x1xf32>
    %32 = tpu.concatenate %28, %31 in 1 : vector<8x1xf32>, vector<8x1xf32> -> vector<8x2xf32>
    %c0_13 = arith.constant 0 : index
    %c0_14 = arith.constant 0 : index
    %c0_15 = arith.constant 0 : index
    %c0_16 = arith.constant 0 : index
    %33 = vector.load %arg6[%c0_13, %c0_14, %c0_15, %c0_16] : memref<1x1x8x2xf32, #tpu.memory_space<vmem>>, vector<1x1x8x2xf32>
    %34 = vector.shape_cast %33 : vector<1x1x8x2xf32> to vector<8x2xf32>
    %35 = vector.shape_cast %32 : vector<8x2xf32> to vector<1x1x8x2xf32>
    tpu.vector_store %arg6[%c0_13, %c0_14, %c0_15, %c0_16], %35 {strides = array<i32>} : memref<1x1x8x2xf32, #tpu.memory_space<vmem>>, vector<1x1x8x2xf32>,
    return
  }
  func.func @transform_0(%arg0: i32, %arg1: i32) -> (i32, i32, i32, i32) {
    %c0_i32 = arith.constant 0 : i32
    %c0_i32_0 = arith.constant 0 : i32
    %c0_i32_1 = arith.constant 0 : i32
    return %arg0, %arg1, %c0_i32, %c0_i32_0 : i32, i32, i32, i32
  }
  func.func @transform_1(%arg0: i32, %arg1: i32) -> (i32, i32) {
    %c0_i32 = arith.constant 0 : i32
    %c0_i32_0 = arith.constant 0 : i32
    %c0_i32_1 = arith.constant 0 : i32
    return %c0_i32, %c0_i32_0 : i32, i32
  }
  func.func @transform_2(%arg0: i32, %arg1: i32) -> (i32, i32) {
    %c0_i32 = arith.constant 0 : i32
    %c0_i32_0 = arith.constant 0 : i32
    %c0_i32_1 = arith.constant 0 : i32
    return %c0_i32, %c0_i32_0 : i32, i32
  }
  func.func @transform_3(%arg0: i32, %arg1: i32) -> (i32, i32, i32) {
    %c0_i32 = arith.constant 0 : i32
    %c0_i32_0 = arith.constant 0 : i32
    return %arg0, %c0_i32, %arg1 : i32, i32, i32
  }
  func.func @transform_4(%arg0: i32, %arg1: i32) -> (i32, i32, i32, i32) {
    %c0_i32 = arith.constant 0 : i32
    %c0_i32_0 = arith.constant 0 : i32
    %c0_i32_1 = arith.constant 0 : i32
    return %arg0, %arg1, %c0_i32, %c0_i32_0 : i32, i32, i32, i32
  }
}

</mosaic_0001>

<bundles_post_ra>
// kernel: tpu_custom_call.1
= control target key start
LH: loop header
LB: loop body
LE: loop exit
PB: predicated region body
PF: predicated region fallthrough
CT: control target
= control target key end

     0   :  { %10 = vsyncpa [#allocation3], 0  ;;  %s929_s0 = inlined_call_operand.hbm [shape: bf16[2,1,16,21], index: 0, kind: input, shape index: {}]   ;;  %s930_s1 = inlined_call_operand.vmem [shape: bf16[8,48], index: 1, kind: input, shape index: {}]   ;;  %s931_s2 = inlined_call_operand.vmem [shape: f32[8,1], index: 2, kind: input, shape index: {}]   ;;  %s932_s3 = inlined_call_operand.hbm [shape: bf16[2,8,18], index: 3, kind: output, shape index: {0}]   ;;  %s933_s4 = inlined_call_operand.vmem [shape: f32[2,1,8,2], index: 4, kind: output, shape index: {1}]  }
   0x1   :  { %12 = vsyncpa [#allocation3 + $0x1], 0 }
   0x2   :  { %13 = vsyncpa [#allocation4], 0 }
   0x3   :  { %15 = vsyncpa [#allocation4 + $0x1], 0  ;;  %s742_s15 = smov 0   ;;  %s744_s16 = smov 0  }
   0x4   :  { %s746_s17 = smov 0   ;;  %s748_s18 = smov 0  }
   0x5   :  { %s750_s19 = smov 0   ;;  %s752_s20 = smov 0  }
   0x6 LB: > { %s487_s21 = sadd.s32 4294967295, %s706_s20   ;;  %s488_s22 = sadd.s32 4294967294, %s706_s20   ;;  %s706_s20 = sphi %s752_s20, %s21_s20   ;;  %s702_s19 = sphi %s750_s19, %s948_s19   ;;  %s698_s18 = sphi %s748_s18, %s947_s18   ;;  %s694_s17 = sphi %s746_s17, %s946_s17   ;;  %s690_s16 = sphi %s744_s16, %s945_s16   ;;  %s686_s15 = sphi %s742_s15, %s944_s15  }
   0x7   : > { %s33_s23 = sadd.s32 1, %s702_s19  ;;  %s42_s24 = sadd.s32 1, %s694_s17 }
   0x8   : > { %p35_p0 = scmp.ge.s32.totalorder %s33_s23, 2  ;;  %p49_p1 = scmp.ne.s32.totalorder %s694_s17, %s690_s16 }
   0x9   : > { %p50_p2 = scmp.eq.s32.totalorder %s706_s20, 0  ;;  %p55_p3 = scmp.ne.s32.totalorder %s690_s16, %s686_s15 }
   0xa   : > { %s950_s23 = smov (%p35_p0, %s33_s23), 0  ;;  %p56_p5 = scmp.eq.s32.totalorder %s487_s21, 0 }
   0xb   : > { %p783_p4 = por %p50_p2, %p49_p1  ;;  %s37_s26 = ssub.s32 %s702_s19, %s950_s23 }
   0xc   : > { %p123_p6 = scmp.eq.s32.totalorder %s487_s21, 1  ;;  %p40_p7 = scmp.eq.s32.totalorder %s37_s26, 0 }
   0xd   : > { %p789_p8 = por %p56_p5, %p55_p3  ;;  %p129_p10 = scmp.eq.s32.totalorder %s488_s22, 1 }
   0xe   : > { %p793_p9 = por %p123_p6, %p49_p1  ;;  %p534_p13 = scmp.lt.s32.totalorder %s706_s20, 2 }
   0xf   : > { %s798_s29 = scalar_select %p40_p7, %s694_s17, %s42_s24  }
  0x10   : > { %s937_s28 = scalar_select %p793_p9, 1, 0 }
  0x11   : > { %p800_p11 = por %p129_p10, %p55_p3  ;;  %s183_s5 = sand.u32 1, %s694_s17  }
  0x12   : > { %s491_s6 = sshll.u32 %s183_s5, 3  ;;  %s506_s7 = sshll.u32 %s702_s19, 7 }
  0x13   : > { %s938_s30 = scalar_select %p800_p11, 1, 0 }
  0x14   : > { %s811_s10 = scalar_lea.hbm %s929_s0, %s506_s7  ;;  %s187_s11 = scalar_lea.vmem [#allocation2], %s491_s6 }
  0x15   : > { %s196_s12 = sshll.u32 %s187_s11, 4  ;;  %p817_p0 = pnand %p534_p13, %p783_p4  ;;  %s813_s12 = int_to_ptr.vmem [resolvable:$true] %s196_s12 }
  0x16   : > { %s822_s14 = scalar_lea.sflag [#allocation3], %s183_s5  ;;  %s594_s21 = scalar_lea.hbm %s811_s10, 128 }
  0x17   : > { %p595_p2 = scmp.ne.s32.totalorder %s811_s10, %s594_s21  ;;  %p596_p3 = pneg %p817_p0 }
  0x18   : > { %s599_s25 = scalar_lea.hbm %s929_s0, 256  ;;  %p600_p4 = scmp.lt.u32.totalorder %s811_s10, %s929_s0 }
  0x19   : > { %p597_p5 = pnand %p596_p3, %p595_p2  ;;  %p601_p7 = scmp.lt.u32.totalorder %s599_s25, %s594_s21 }
  0x1a   : > { %p603_p13 = scmp.lt.u32.totalorder %s594_s21, %s811_s10 }
  0x1b   : > { %p598_p6 = pneg %p597_p5  ;;  %p602_p10 = por %p601_p7, %p600_p4 }
  0x1d   : > { %p604_p12 = por %p603_p13, %p602_p10 }
  0x1f   : > { %p605_p1 = pnand %p604_p12, %p598_p6 }
  0x21   : > { %608 = shalt.err (!%p605_p1)
}
  0x22   : > { %s609_s5 = scalar_lea.vmem %s813_s12, 128  ;;  %s708_s7 = smov [#allocation2]  }
  0x23   : > { %p610_p2 = scmp.ne.s32.totalorder %s813_s12, %s609_s5  ;;  %s614_s8 = sshll.u32 %s708_s7, 4  ;;  %s615_s8 = int_to_ptr.vmem [resolvable:$false] %s614_s8 }
  0x24   : > { %s616_s9 = scalar_lea.vmem %s615_s8, 256  ;;  %p617_p9 = scmp.lt.s32.totalorder %s813_s12, %s615_s8 }
  0x25   : > { %p612_p5 = pnand %p610_p2, %p596_p3  ;;  %p618_p4 = scmp.lt.s32.totalorder %s616_s9, %s609_s5 }
  0x27   : > { %p613_p11 = pneg %p612_p5  ;;  %p619_p7 = por %p618_p4, %p617_p9 }
  0x29   : > { %p620_p10 = pnand %p619_p7, %p613_p11 }
  0x2b   : > { %623 = shalt.err (!%p620_p10)
}
  0x2c   : > { %s709_s11 = smov 64   ;;  %s710_s21 = smov 4  }
  0x2d   : > { %529 = dma.hbm_to_vmem [thread:$0]  (!%p817_p0), %s811_s10, 128, %s813_s12, %s822_s14, %s709_s11, %s709_s11, %s710_s21  }
  0x2e   : > { %p204_p12 = scmp.lt.s32.totalorder %s706_s20, 3  ;;  %p940_p1 = scmp.ge.s32.totalorder %s706_s20, 1 }
  0x30   : > { %p205_p3 = pnand %p940_p1, %p204_p12 }
  0x31   : > { %s854_s22 = sand.u32 (!%p205_p3), 1, %s690_s16  }
  0x32   : > { %208 = sbr.rel (%p205_p3) target bundleno = 562 (0x232), region = 32  ;;  %s495_s24 = sshll.u32 (!%p205_p3), %s854_s22, 3 }
  0x33   : > { %s211_s25 = scalar_lea.sflag (!%p205_p3), [#allocation3], %s854_s22  ;;  %s214_s26 = scalar_lea.vmem (!%p205_p3), [#allocation2], %s495_s24 }
  0x39   : > { %677 = dma.done.wait (%p789_p8), %s211_s25, 128  }
  0x3a   : > { %679 = vsyncadd (%p789_p8), %s211_s25, 4294967168  ;;  %v711_v0 = vmov 0.0   ;;  %vm712_vm0 = vmmov 0   ;;  %v713_v1 = vmov 0   ;;  %v593_v2 = vld [vmem:[%s214_s26] sm:$0xff]   ;;  %s714_s13 = smov 127   ;;  %v329_v7 = vlaneseq }
  0x3b   : > { %512 = vmatprep.subr.bf16.mxu0 %v711_v0  ;;  %518 = vmatprep.mubr.msk.bf16.mxu0 %vm712_vm0, %v711_v0  ;;  %v269_v3 = vld [vmem:[%s931_s2] sm:$0xff]  ;;  %s715_s27 = smov 126   ;;  %vm275_vm1 = vcmask 392192   ;;  %vm337_vm3 = vcmask 146432   ;;  %p246_p8 = scmp.lt.s32.totalorder %s698_s18, 1  ;;  %vm345_vm4 = vcmask 7168  }
  0x3c   : > { %591 = vset.pattern.permute.xlu1 %v713_v1  ;;  %592 = vset.pattern.permute.xlu0 %v713_v1  ;;  %v268_v6 = vld [vmem:[%s930_s1] sm:$0xf]  ;;  %v330_v8 = vand.u32 127, %v329_v7  ;;  %s496_s7 = sshll.u32 %s854_s22, 2  ;;  %vm347_vm5 = vcmask 15360   ;;  %s503_s24 = sshll.u32 %s698_s18, 6 }
  0x3d   : > { %262 = vrot.lane.b32.xlu0 %v593_v2, %s714_s13  ;;  %513 = vmatpush3.bf16.msra.mxu0 %v593_v2  ;;  %s247_s5 = scalar_select %p246_p8, %s698_s18, 1  ;;  %vm326_vm6 = vcmask 142336  }
  0x3e   : > { %514 = vmatprep.subr.bf16.mxu0 %v711_v0  ;;  %272 = vperm.xlu1 %591, %v269_v3   ;;  %vm333_vm2 = vcmp.lt.s32.totalorder %v330_v8, 18  ;;  %s236_s25 = scalar_lea.vmem [#allocation5], %s496_s7  ;;  %p941_p11 = scmp.ne.s32.totalorder %s937_s28, 0 }
  0x3f   : > { %v501_v11 = vsel %vm333_vm2, 1.0, %v711_v0  ;;  %s497_s8 = sshll.u32 %s247_s5, 3  ;;  %s371_s26 = sshll.u32 %s236_s25, 4  ;;  %s882_s26 = int_to_ptr.vmem [resolvable:$true] %s371_s26 }
  0x40   : > { %s252_s21 = scalar_lea.vmem %s933_s4, %s497_s8  ;;  %s624_s14 = scalar_lea.vmem %s882_s26, 64 }
  0x41   : > { %265 = vrot.lane.b32.xlu0 %v593_v2, %s715_s27  ;;  %s350_s27 = scalar_lea.sflag [#allocation4], %s854_s22  ;;  %p625_p9 = scmp.ne.s32.totalorder %s882_s26, %s624_s14 }
  0x42   : > { %s716_s18 = smov [#allocation5]  }
  0x43   : > { %p626_p0 = pnand %p625_p9, %p941_p11  ;;  %s628_s6 = sshll.u32 %s716_s18, 4  ;;  %s629_s6 = int_to_ptr.vmem [resolvable:$false] %s628_s6 }
  0x44   : > { %s630_s5 = scalar_lea.vmem %s629_s6, 128  ;;  %p631_p13 = scmp.lt.s32.totalorder %s882_s26, %s629_s6 }
  0x45   : > { %p627_p6 = pneg %p626_p0  ;;  %p632_p2 = scmp.lt.s32.totalorder %s630_s5, %s624_s14 }
  0x47   : > { %p633_p5 = por %p632_p2, %p631_p13 }
  0x49   : > { %p634_p4 = pnand %p633_p5, %p627_p6 }
  0xaf   : > { %v263_v4 = vpop.permute.xlu0 %262 }
  0xb0   : > { %515 = vmatpush3.bf16.msra.mxu0 %v263_v4 }
  0xb1   : > { %516 = vmatprep.subr.bf16.mxu0 %v711_v0 }
  0xb3   : > { %v266_v5 = vpop.permute.xlu0 %265 }
  0xb4   : > { %517 = vmatpush3.bf16.msra.mxu0 %v266_v5 }
  0xb7   : > { %519 = vmatmul.mubr.msk.bf16.vlgmr.msra.gmra.mrb[0].mxu0 %vm275_vm1, %v268_v6 }
  0xbd   : > { %v273_v9 = vpop.permute.xlu1 %272 }
 0x18a   : > { %v313_v10 = vpop.f32.mrb[0].mxu0 }
 0x18b   : > { %v314_v12 = vadd.f32 %v313_v10, %v273_v9  ;;  %v520_v13 = vpop.f32.mrb[1].mxu0 }
 0x18c   : > { %v316_v14 = vpop.f32.mrb[2].mxu0 }
 0x18d   : > { %v521_v15 = vpop.f32.mrb[3].mxu0  ;;  %v336_v16 = vmul.f32 %v501_v11, %v314_v12  ;;  %v507_v20 = vpack.c.bf16 %v314_v12, %v314_v12 }
 0x18f   : > { %v338_v17 = vsel %vm337_vm3, %v336_v16, 0.0  ;;  %v341_v18 = vmul.f32 %v336_v16, %v314_v12 }
 0x190   : > { %339 = vadd.xlane.f32.xlu1 %v338_v17 }
 0x191   : > { %v342_v19 = vsel %vm337_vm3, %v341_v18, 0.0 }
 0x192   : > { %343 = vadd.xlane.f32.xlu0 %v342_v19 }
 0x1a8   : > { %323 = vrot.lane.b32.xlu0 %v507_v20, %s714_s13  ;;  %s880_s13 = scalar_lea.hbm %s932_s3, %s503_s24 }
 0x21d   : > { %v340_v21 = vpop.xlane.xlu1 %339 }
 0x21f   : > { %v344_v22 = vpop.xlane.xlu0 %343 }
 0x220   : > { %v346_v23 = vsel %vm345_vm4, %v340_v21, %v344_v22 }
 0x221   : > { %348 = vst.msk [vmem:[%s252_s21] sm:$0xff] %vm347_vm5, %v346_v23 }
 0x223   : > { %v324_v24 = vpop.permute.xlu0 %323 }
 0x224   : > { %327 = vst.msk [vmem:[%s236_s25] sm:$0xf] %vm326_vm6, %v324_v24 }
 0x225   : > { %637 = shalt.err (!%p634_p4)
}
 0x226   : > { %s638_s22 = scalar_lea.hbm %s880_s13, 64  ;;  %s642_s9 = scalar_lea.hbm %s932_s3, 128 }
 0x227   : > { %p639_p7 = scmp.ne.s32.totalorder %s880_s13, %s638_s22  ;;  %p643_p1 = scmp.lt.u32.totalorder %s880_s13, %s932_s3 }
 0x228   : > { %p644_p3 = scmp.lt.u32.totalorder %s642_s9, %s638_s22  ;;  %p646_p9 = scmp.lt.u32.totalorder %s638_s22, %s880_s13 }
 0x229   : > { %p640_p10 = pnand %p639_p7, %p941_p11 }
 0x22a   : > { %p645_p8 = por %p644_p3, %p643_p1 }
 0x22b   : > { %p641_p12 = pneg %p640_p10 }
 0x22c   : > { %p647_p0 = por %p646_p9, %p645_p8 }
 0x22e   : > { %p648_p6 = pnand %p647_p0, %p641_p12 }
 0x230   : > { %651 = shalt.err (!%p648_p6)
}
 0x231   : > { %524 = dma.vmem_to_hbm [thread:$0]  (%p941_p11), %s882_s26, 64, %s880_s13, %s350_s27  }
 0x232 PF: > { %s386_s24 = sand.u32 1, %s686_s15   ;;  %p942_p13 = scmp.ne.s32.totalorder %s938_s30, 0 }
 0x233   : > { %p943_p2 = scmp.ge.s32.totalorder %s706_s20, 2  ;;  %s387_s25 = scalar_lea.sflag [#allocation4], %s386_s24 }
 0x235   : > { %p531_p5 = pnand %p943_p2, %p942_p13 }
 0x237   : > { %681 = dma.done.wait (!%p531_p5), %s387_s25, 64  }
 0x238   : > { %683 = vsyncadd (!%p531_p5), %s387_s25, 4294967232  ;;  %s21_s20 = sadd.s32 1, %s706_s20   ;;  %s944_s15 = smov %s690_s16 }
 0x239   : > { %p18_p4 = scmp.ge.s32.totalorder %s21_s20, 4   ;;  %s945_s16 = smov %s694_s17 }
 0x23a   : > { %s946_s17 = smov %s798_s29  ;;  %s947_s18 = smov %s702_s19 }
 0x23b   : > { %s948_s19 = smov %s950_s23  ;;  %20 = sbr.rel (!%p18_p4) target bundleno = 6 (0x6), region = 89 }
 0x242   :  { %402 = vsyncpa [#allocation3], 1 }
 0x243   :  { %404 = vsyncpa [#allocation3 + $0x1], 1 }
 0x244   :  { %405 = vsyncpa [#allocation4], 1 }
 0x245   :  { %407 = vsyncpa [#allocation4 + $0x1], 1 }

</bundles_post_ra>
